<compile_context>
chip_gen: v6e
topology: v6e:2x2x1
jax: 0.10.0
libtpu: 0.0.40
codegen_flags: <defaults>
</compile_context>

<pallas_src>
import functools

import jax
import jax.numpy as jnp
from jax import lax
from jax.experimental import pallas as pl
from jax.experimental.pallas import tpu as pltpu


# ----------------------------------------------------------------------------
# In-kernel helpers
# ----------------------------------------------------------------------------
def _apply_mask(f, m, batch, ch):
    """Apply per-batch spatial mask to flattened feature rows.

    f: (batch*ch, tk) feature tile, m: (batch, tk) mask tile.  Row r of f
    belongs to batch r // ch.  Single one-hot (bc, batch) expansion on the
    MXU (no O(B) broadcast/where chain, no reshape/concat).
    """
    if batch == 1:
        return f * m  # (ch, tk) * (1, tk) sublane broadcast
    bc = batch * ch
    rows = lax.broadcasted_iota(jnp.int32, (bc, batch), 0) // ch
    cols = lax.broadcasted_iota(jnp.int32, (bc, batch), 1)
    expand = (rows == cols).astype(f.dtype)          # (bc, batch) one-hot
    m_full = lax.dot_general(
        expand, m.astype(f.dtype),
        dimension_numbers=(((1,), (0,)), ((), ())),
        preferred_element_type=f.dtype)              # (bc, tk)
    return f * m_full


def _gram_partial(f):
    """F_tile @ F_tile^T via dot_general (contract last dims — no transpose)."""
    return lax.dot_general(
        f, f,
        dimension_numbers=(((1,), (1,)), ((), ())),
        preferred_element_type=jnp.float32)


# ----------------------------------------------------------------------------
# Kernels
# ----------------------------------------------------------------------------
def _gram_kernel(*refs, batch, ch, inv_norm, has_mask, cast_bf16):
    # grid = (num_splits "parallel", nk "arbitrary")
    # in: feat (BC, tk) [, mask (B, tk)] ; out: partial Gram (BC, BC) f32.
    if has_mask:
        feat_ref, mask_ref, g_ref = refs
    else:
        feat_ref, g_ref = refs
        mask_ref = None
    k = pl.program_id(1)

    f = feat_ref[...]
    if has_mask:
        f = _apply_mask(f, mask_ref[...], batch, ch)
    if cast_bf16:
        f = f.astype(jnp.bfloat16)
    part = _gram_partial(f)

    @pl.when(k == 0)
    def _init():
        g_ref[...] = part          # direct write: no zero-init + RMW

    @pl.when(k > 0)
    def _accum():
        g_ref[...] += part

    @pl.when(k == pl.num_programs(1) - 1)
    def _finalize():
        g_ref[...] = g_ref[...] * inv_norm


def _style_loss_kernel(*refs, batch, ch, inv_norm, has_mask, cast_bf16):
    # grid = (nk,) "arbitrary" (single-core fused path)
    # in: feat (BC, tk) [, mask (B, tk)], target (BC, BC)
    # out: loss (1, 1) ; scratch: acc (BC, BC) f32.
    if has_mask:
        feat_ref, mask_ref, target_ref, loss_ref, acc_ref = refs
    else:
        feat_ref, target_ref, loss_ref, acc_ref = refs
        mask_ref = None
    k = pl.program_id(0)

    f = feat_ref[...]
    if has_mask:
        f = _apply_mask(f, mask_ref[...], batch, ch)
    if cast_bf16:
        f = f.astype(jnp.bfloat16)
    part = _gram_partial(f)

    @pl.when(k == 0)
    def _init():
        acc_ref[...] = part

    @pl.when(k > 0)
    def _accum():
        acc_ref[...] += part

    @pl.when(k == pl.num_programs(0) - 1)
    def _finalize():
        d = acc_ref[...] * inv_norm - target_ref[...]
        loss_ref[0, 0] = jnp.mean(d * d)


# ----------------------------------------------------------------------------
# Wrapper helpers
# ----------------------------------------------------------------------------
def _tpu_vmem_capacity():
    try:
        return int(pltpu.get_tpu_info().vmem_capacity_bytes)
    except Exception:
        return 128 << 20


def _default_num_splits():
    # v7x has 2 TensorCores per chip; shard the H*W reduction across them.
    try:
        kind = jax.devices()[0].device_kind.lower()
    except Exception:
        return 1
    return 2 if ("v7" in kind or "7x" in kind) else 1


def _cast_bf16(bc, dtype):
    # Only in the MXU-bound regime; keeps small-BC results bit-tight f32.
    return bool(bc >= 512 and jnp.dtype(dtype) == jnp.dtype(jnp.float32))


def _tiling(hw_split, bc, b, itemsize, has_mask, has_target, block_k):
    """VMEM-budget-derived K tile: biggest multiple of 128 dividing hw_split
    that keeps double-buffered inputs + resident accumulator/target under the
    generation-aware ceiling."""
    ceiling = int(min(48 << 20, _tpu_vmem_capacity() // 2))
    resident = 2 * bc * bc * 4 + (2 * bc * bc * 4 if has_target else 0) + (2 << 20)
    per_k = 2 * (bc + (b if has_mask else 0)) * itemsize   # double-buffered inputs
    cap = max(((ceiling - resident) // max(per_k, 1)) // 128 * 128, 128)
    if block_k is not None:
        tk = int(block_k)
        if hw_split % tk != 0:
            tk = hw_split
    elif hw_split <= cap:
        tk = hw_split                                       # single grid step
    else:
        tk = 128
        t = (min(cap, hw_split) // 128) * 128
        while t >= 128:
            if hw_split % t == 0:
                tk = t
                break
            t -= 128
    return tk, hw_split // tk, ceiling


def _prepare(x, mask, num_splits):
    b, c, h, w = x.shape
    bc, hw = b * c, h * w
    inv_norm = 1.0 / float(b * c * h * w)   # true (un-padded) normalizer
    ns = _default_num_splits() if num_splits is None else max(1, int(num_splits))
    feat = x.reshape(bc, hw)                # layout-only reshape (XLA glue)
    mask_flat = None
    if mask is not None:
        mask_flat = mask.reshape(b, hw).astype(feat.dtype)   # small (B, HW)
    # Zero-pad HW to a multiple of 128 * num_splits (zeros do not change
    # F @ F.T) — avoids the old "one huge block" fallback for odd HW.
    pad_to = 128 * ns
    hw_pad = ((hw + pad_to - 1) // pad_to) * pad_to
    if hw_pad != hw:
        feat = jnp.pad(feat, ((0, 0), (0, hw_pad - hw)))
        if mask_flat is not None:
            mask_flat = jnp.pad(mask_flat, ((0, 0), (0, hw_pad - hw)))
    itemsize = jnp.dtype(feat.dtype).itemsize
    return dict(b=b, c=c, bc=bc, hw_pad=hw_pad, inv_norm=inv_norm, ns=ns,
                feat=feat, mask_flat=mask_flat, itemsize=itemsize)


def _cost(bc, hw_pad, itemsize, has_mask, b, out_bytes):
    bytes_accessed = bc * hw_pad * itemsize + out_bytes
    if has_mask:
        bytes_accessed += b * hw_pad * itemsize
    return pl.CostEstimate(flops=2 * bc * bc * hw_pad, transcendentals=0,
                           bytes_accessed=int(bytes_accessed))


# ----------------------------------------------------------------------------
# Public wrappers
# ----------------------------------------------------------------------------
def gram_matrix(x, mask=None, *, block_k=None, num_splits=None):
    """Pallas Gram matrix: (F @ F.T) / (B*C*H*W) with optional spatial mask."""
    p = _prepare(x, mask, num_splits)
    b, c, bc, ns = p["b"], p["c"], p["bc"], p["ns"]
    feat, mask_flat = p["feat"], p["mask_flat"]
    has_mask = mask_flat is not None
    hw_split = p["hw_pad"] // ns
    tk, nk, vmem_limit = _tiling(hw_split, bc, b, p["itemsize"], has_mask,
                                 has_target=False, block_k=block_k)
    cast_bf16 = _cast_bf16(bc, feat.dtype)

    in_specs = [pl.BlockSpec((bc, tk), lambda s, k: (0, s * nk + k))]
    args = [feat]
    if has_mask:
        in_specs.append(pl.BlockSpec((b, tk), lambda s, k: (0, s * nk + k)))
        args.append(mask_flat)

    kernel = functools.partial(_gram_kernel, batch=b, ch=c,
                               inv_norm=p["inv_norm"], has_mask=has_mask,
                               cast_bf16=cast_bf16)
    partials = pl.pallas_call(
        kernel,
        out_shape=jax.ShapeDtypeStruct((ns, bc, bc), jnp.float32),
        grid_spec=pltpu.PrefetchScalarGridSpec(
            num_scalar_prefetch=0,
            grid=(ns, nk),
            in_specs=in_specs,
            out_specs=pl.BlockSpec((None, bc, bc), lambda s, k: (s, 0, 0)),
        ),
        compiler_params=pltpu.CompilerParams(
            dimension_semantics=("parallel", "arbitrary"),
            vmem_limit_bytes=vmem_limit),
        cost_estimate=_cost(bc, p["hw_pad"], p["itemsize"], has_mask, b,
                            ns * bc * bc * 4),
    )(*args)
    return partials[0] if ns == 1 else partials.sum(axis=0)


def style_loss(x, target_gram, mask=None, *, block_k=None, num_splits=None):
    """MSE(gram_matrix(x * mask), target).

    num_splits == 1 (v5e/v6e default): fused loss-only kernel, no Gram
    writeback to HBM.  num_splits > 1 (v7x): per-core partial Grams combined
    by a tiny wrapper epilogue."""
    ns = _default_num_splits() if num_splits is None else max(1, int(num_splits))
    if ns > 1:
        g = gram_matrix(x, mask, block_k=block_k, num_splits=ns)
        d = g - target_gram.astype(jnp.float32)
        return jnp.mean(d * d)

    p = _prepare(x, mask, 1)
    b, c, bc = p["b"], p["c"], p["bc"]
    feat, mask_flat = p["feat"], p["mask_flat"]
    has_mask = mask_flat is not None
    tk, nk, vmem_limit = _tiling(p["hw_pad"], bc, b, p["itemsize"], has_mask,
                                 has_target=True, block_k=block_k)
    cast_bf16 = _cast_bf16(bc, feat.dtype)

    in_specs = [pl.BlockSpec((bc, tk), lambda k: (0, k))]
    args = [feat]
    if has_mask:
        in_specs.append(pl.BlockSpec((b, tk), lambda k: (0, k)))
        args.append(mask_flat)
    in_specs.append(pl.BlockSpec((bc, bc), lambda k: (0, 0)))   # k-invariant
    args.append(target_gram.astype(jnp.float32))

    kernel = functools.partial(_style_loss_kernel, batch=b, ch=c,
                               inv_norm=p["inv_norm"], has_mask=has_mask,
                               cast_bf16=cast_bf16)
    loss = pl.pallas_call(
        kernel,
        out_shape=jax.ShapeDtypeStruct((1, 1), jnp.float32),
        grid_spec=pltpu.PrefetchScalarGridSpec(
            num_scalar_prefetch=0,
            grid=(nk,),
            in_specs=in_specs,
            out_specs=pl.BlockSpec((1, 1), lambda k: (0, 0)),
            scratch_shapes=[pltpu.VMEM((bc, bc), jnp.float32)],
        ),
        compiler_params=pltpu.CompilerParams(
            dimension_semantics=("arbitrary",),
            vmem_limit_bytes=vmem_limit),
        cost_estimate=_cost(bc, p["hw_pad"], p["itemsize"], has_mask, b,
                            bc * bc * 4 + 4),
    )(*args)
    return loss[0, 0]


# ----------------------------------------------------------------------------
# Module
# ----------------------------------------------------------------------------
class StyleLoss:
    """JAX/Pallas port of the PyTorch StyleLoss module."""

    def __init__(self, target_feature, mask=None):
        b, c, h, w = target_feature.shape
        if mask is None:
            self.mask = None
            self.target = gram_matrix(target_feature)
        else:
            # TODO(synk): F.interpolate (nearest mask resize to (h, w)) is
            # init-time glue; done with jax.image.resize outside the kernel.
            mask_small = jax.image.resize(
                mask, (mask.shape[0], mask.shape[1], h, w), method="nearest")
            self.mask = mask_small
            self.target = gram_matrix(target_feature, mask_small)
        self.loss = jnp.float32(0.0)

    def __call__(self, x):
        # TODO(synk): the stateful `self.loss` attribute mirrors the PyTorch
        # module but is not jit/trace friendly (wrapper glue, not kernel).
        self.loss = style_loss(x, self.target, self.mask)
        return x  # module passes the input through, like the PyTorch version


# ----------------------------------------------------------------------------
# Reference + test
# ----------------------------------------------------------------------------
def _gram_ref(x):
    b, c, h, w = x.shape
    f = x.reshape(b * c, h * w).astype(jnp.float32)
    return (f @ f.T) / (b * c * h * w)


if __name__ == "__main__":
    key = jax.random.PRNGKey(0)
    k1, k2, k3 = jax.random.split(key, 3)

    B, C, H, W = 2, 4, 16, 16
    target_feature = jax.random.normal(k1, (B, C, H, W), jnp.float32)
    x = jax.random.normal(k2, (B, C, H, W), jnp.float32)
    mask = (jax.random.uniform(k3, (B, 1, 8, 8)) > 0.5).astype(jnp.float32)

    # --- no-mask path (module) ---
    sl = StyleLoss(target_feature)
    out = sl(x)
    jax.block_until_ready(out)
    jax.block_until_ready(sl.loss)

    g_ref = _gram_ref(x)
    t_ref = _gram_ref(target_feature)
    loss_ref = jnp.mean((g_ref - t_ref) ** 2)
    assert jnp.allclose(sl.target, t_ref, rtol=1e-5, atol=1e-6)
    assert jnp.allclose(sl.loss, loss_ref, rtol=1e-5, atol=1e-6), (sl.loss, loss_ref)
    assert out.shape == x.shape

    # --- masked path (module) ---
    sl_m = StyleLoss(target_feature, mask=mask)
    out_m = sl_m(x)
    jax.block_until_ready(out_m)
    jax.block_until_ready(sl_m.loss)

    mask_small = jax.image.resize(mask, (B, 1, H, W), method="nearest")
    g_ref_m = _gram_ref(x * mask_small)
    t_ref_m = _gram_ref(target_feature * mask_small)
    loss_ref_m = jnp.mean((g_ref_m - t_ref_m) ** 2)
    assert jnp.allclose(sl_m.target, t_ref_m, rtol=1e-5, atol=1e-6)
    assert jnp.allclose(sl_m.loss, loss_ref_m, rtol=1e-5, atol=1e-6)

    # --- explicitly exercise the K-tiled (grid > 1) accumulation path ---
    g_tiled = gram_matrix(x, block_k=128)
    assert jnp.allclose(g_tiled, g_ref, rtol=1e-5, atol=1e-6)
    loss_tiled = style_loss(x, sl.target, None, block_k=128)
    assert jnp.allclose(loss_tiled, loss_ref, rtol=1e-5, atol=1e-6)
    loss_tiled_m = style_loss(x, sl_m.target, sl_m.mask, block_k=128)
    assert jnp.allclose(loss_tiled_m, loss_ref_m, rtol=1e-5, atol=1e-6)

    # --- dual-TensorCore (partial-Gram) path; runs serially on 1-TC chips ---
    g_split = gram_matrix(x, num_splits=2)
    assert jnp.allclose(g_split, g_ref, rtol=1e-5, atol=1e-6)
    loss_split_m = style_loss(x, sl_m.target, sl_m.mask, num_splits=2)
    assert jnp.allclose(loss_split_m, loss_ref_m, rtol=1e-5, atol=1e-6)

    # --- HW not a multiple of 128 -> zero-padding path ---
    x_odd = jax.random.normal(k3, (1, 4, 10, 10), jnp.float32)
    g_odd = gram_matrix(x_odd)
    jax.block_until_ready(g_odd)
    assert jnp.allclose(g_odd, _gram_ref(x_odd), rtol=1e-5, atol=1e-6)

    print("KERNEL_OK")
</pallas_src>

<mosaic_0001>
module attributes {stable_mosaic.version = 11 : i64} {
  func.func @_gram_kernel(%arg0: i32, %arg1: i32, %arg2: memref<8x256xf32, #tpu.memory_space<vmem>>, %arg3: memref<1x8x8xf32, #tpu.memory_space<vmem>>) attributes {dimension_semantics = [#tpu.dimension_semantics<parallel>, #tpu.dimension_semantics<arbitrary>], iteration_bounds = array<i64: 1, 1>, scalar_prefetch = 0 : i64, scratch_operands = 0 : i64, tpu.core_type = #tpu.core_type<tc>, window_params = [{transform_indices = @transform_0, window_bounds = array<i64: 8, 256>}, {transform_indices = @transform_1, window_bounds = array<i64: 1, 8, 8>}]} {
    %c0 = arith.constant 0 : index
    %c0_0 = arith.constant 0 : index
    %0 = vector.load %arg2[%c0, %c0_0] : memref<8x256xf32, #tpu.memory_space<vmem>>, vector<8x256xf32>
    %cst = arith.constant dense<0.000000e+00> : vector<8x8xf32>
    %1 = tpu.matmul %0, %0, %cst {dimension_numbers = #tpu.dot_dimension_numbers<[1], [1], [0], [0], [0, 0, 1, 0], [], []>} : vector<8x256xf32>, vector<8x256xf32>, vector<8x8xf32> -> vector<8x8xf32>
    %c0_i32 = arith.constant 0 : i32
    %2 = arith.cmpi eq, %arg1, %c0_i32 : i32
    %3 = arith.extui %2 : i1 to i32
    %c0_i32_1 = arith.constant 0 : i32
    %4 = arith.cmpi ne, %3, %c0_i32_1 : i32
    scf.if %4 {
      %c0_6 = arith.constant 0 : index
      %c0_7 = arith.constant 0 : index
      %c0_8 = arith.constant 0 : index
      %11 = vector.load %arg3[%c0_6, %c0_7, %c0_8] : memref<1x8x8xf32, #tpu.memory_space<vmem>>, vector<1x8x8xf32>
      %12 = vector.shape_cast %11 : vector<1x8x8xf32> to vector<8x8xf32>
      %13 = vector.shape_cast %1 : vector<8x8xf32> to vector<1x8x8xf32>
      tpu.vector_store %arg3[%c0_6, %c0_7, %c0_8], %13 {strides = array<i32>} : memref<1x8x8xf32, #tpu.memory_space<vmem>>, vector<1x8x8xf32>,
    } else {
    }
    %c0_i32_2 = arith.constant 0 : i32
    %5 = arith.cmpi sgt, %arg1, %c0_i32_2 : i32
    %6 = arith.extui %5 : i1 to i32
    %c0_i32_3 = arith.constant 0 : i32
    %7 = arith.cmpi ne, %6, %c0_i32_3 : i32
    scf.if %7 {
      %c0_6 = arith.constant 0 : index
      %c0_7 = arith.constant 0 : index
      %c0_8 = arith.constant 0 : index
      %11 = vector.load %arg3[%c0_6, %c0_7, %c0_8] : memref<1x8x8xf32, #tpu.memory_space<vmem>>, vector<1x8x8xf32>
      %12 = vector.shape_cast %11 : vector<1x8x8xf32> to vector<8x8xf32>
      %13 = arith.addf %12, %1 : vector<8x8xf32>
      %c0_9 = arith.constant 0 : index
      %c0_10 = arith.constant 0 : index
      %c0_11 = arith.constant 0 : index
      %14 = vector.load %arg3[%c0_9, %c0_10, %c0_11] : memref<1x8x8xf32, #tpu.memory_space<vmem>>, vector<1x8x8xf32>
      %15 = vector.shape_cast %14 : vector<1x8x8xf32> to vector<8x8xf32>
      %16 = vector.shape_cast %13 : vector<8x8xf32> to vector<1x8x8xf32>
      tpu.vector_store %arg3[%c0_9, %c0_10, %c0_11], %16 {strides = array<i32>} : memref<1x8x8xf32, #tpu.memory_space<vmem>>, vector<1x8x8xf32>,
    } else {
    }
    %c0_i32_4 = arith.constant 0 : i32
    %8 = arith.cmpi eq, %arg1, %c0_i32_4 : i32
    %9 = arith.extui %8 : i1 to i32
    %c0_i32_5 = arith.constant 0 : i32
    %10 = arith.cmpi ne, %9, %c0_i32_5 : i32
    scf.if %10 {
      %c0_6 = arith.constant 0 : index
      %c0_7 = arith.constant 0 : index
      %c0_8 = arith.constant 0 : index
      %11 = vector.load %arg3[%c0_6, %c0_7, %c0_8] : memref<1x8x8xf32, #tpu.memory_space<vmem>>, vector<1x8x8xf32>
      %12 = vector.shape_cast %11 : vector<1x8x8xf32> to vector<8x8xf32>
      %cst_9 = arith.constant 4.8828125E-4 : f32
      %13 = vector.broadcast %cst_9 : f32 to vector<8x8xf32>
      %14 = arith.mulf %12, %13 : vector<8x8xf32>
      %c0_10 = arith.constant 0 : index
      %c0_11 = arith.constant 0 : index
      %c0_12 = arith.constant 0 : index
      %15 = vector.load %arg3[%c0_10, %c0_11, %c0_12] : memref<1x8x8xf32, #tpu.memory_space<vmem>>, vector<1x8x8xf32>
      %16 = vector.shape_cast %15 : vector<1x8x8xf32> to vector<8x8xf32>
      %17 = vector.shape_cast %14 : vector<8x8xf32> to vector<1x8x8xf32>
      tpu.vector_store %arg3[%c0_10, %c0_11, %c0_12], %17 {strides = array<i32>} : memref<1x8x8xf32, #tpu.memory_space<vmem>>, vector<1x8x8xf32>,
    } else {
    }
    return
  }
  func.func @transform_0(%arg0: i32, %arg1: i32) -> (i32, i32) {
    %c1_i32 = arith.constant 1 : i32
    %0 = arith.muli %arg0, %c1_i32 : i32
    %1 = arith.addi %0, %arg1 : i32
    %c0_i32 = arith.constant 0 : i32
    %c0_i32_0 = arith.constant 0 : i32
    return %c0_i32, %1 : i32, i32
  }
  func.func @transform_1(%arg0: i32, %arg1: i32) -> (i32, i32, i32) {
    %c0_i32 = arith.constant 0 : i32
    %c0_i32_0 = arith.constant 0 : i32
    %c0_i32_1 = arith.constant 0 : i32
    return %arg0, %c0_i32, %c0_i32_0 : i32, i32, i32
  }
}

</mosaic_0001>

<bundles_post_ra>
// kernel: tpu_custom_call.1
= control target key start
LH: loop header
LB: loop body
LE: loop exit
PB: predicated region body
PF: predicated region fallthrough
CT: control target
= control target key end

     0   :  { %6 = vsyncpa [#allocation3], 0  ;;  %s199_s0 = inlined_call_operand.hbm [shape: f32[8,256], index: 0, kind: input, shape index: {}]   ;;  %s200_s1 = inlined_call_operand.hbm [shape: f32[1,8,8], index: 1, kind: output, shape index: {}]  }
   0x1   :  { %7 = vsyncpa [#allocation4], 0  ;;  %s181_s6 = smov [#allocation2]  }
   0x2   :  { %s18_s7 = sshll.u32 %s181_s6, 4  ;;  %s19_s7 = int_to_ptr.vmem [resolvable:$true] %s18_s7 }
   0x3   :  { %s145_s8 = scalar_lea.vmem %s19_s7, 256  ;;  %p150_p1 = scmp.lt.s32.totalorder %s19_s7, %s19_s7 }
   0x4   :  { %p146_p0 = scmp.ne.s32.totalorder %s19_s7, %s145_s8  ;;  %p151_p2 = scmp.lt.s32.totalorder %s145_s8, %s145_s8 }
   0x6   :  { %p152_p3 = por %p151_p2, %p150_p1 }
   0x8   :  { %p153_p4 = pnand %p152_p3, %p146_p0 }
   0xa   :  { %156 = shalt.err (!%p153_p4)
}
   0xb   :  { %21 = dma.hbm_to_vmem [thread:$0]  %s199_s0, 256, %s19_s7, [#allocation3]  }
   0xc   :  { %177 = dma.done.wait [#allocation3], 256  }
   0xd   :  { %178 = vsyncadd [#allocation3], 4294967040  ;;  %v28_v0 = vld [vmem:[#allocation2 + $0x8] sm:$0xff]  ;;  %v27_v1 = vld [vmem:[#allocation2] sm:$0xff]  ;;  %vm103_vm0 = vcmask 64512   ;;  %s182_s11 = smov [#allocation5]  }
   0xe   :  { %59 = vmatprep.subr.mxu0 %v28_v0  ;;  %93 = vmatprep.mubr.f32.mxu0 %v28_v0  ;;  %s126_s12 = sshll.u32 %s182_s11, 4  ;;  %s127_s12 = int_to_ptr.vmem [resolvable:$true] %s126_s12 }
   0xf   :  { %60 = vmatpush1.xpose.msra.mxu0 %v27_v1  ;;  %s157_s13 = scalar_lea.vmem %s127_s12, 128  ;;  %p162_p6 = scmp.lt.s32.totalorder %s127_s12, %s127_s12 }
  0x10   :  { %p158_p5 = scmp.ne.s32.totalorder %s127_s12, %s157_s13  ;;  %p163_p7 = scmp.lt.s32.totalorder %s157_s13, %s157_s13 }
  0x12   :  { %94 = vmatmul.mubr.f32.vlgmr.msra.gmra.mxu0 %v27_v1  ;;  %p164_p8 = por %p163_p7, %p162_p6 }
  0x14   :  { %p165_p9 = pnand %p164_p8, %p158_p5 }
  0xd2   :  { %v95_v2 = vpop.f32.mrf.mxu0 }
  0xd3   :  { %104 = vst.msk [vmem:[#allocation5] sm:$0xff] %vm103_vm0, %v95_v2 }
  0xd4   :  { %v97_v3 = vpop.f32.mrf.mxu0 }
  0xda   :  { %v116_v4 = vld [vmem:[#allocation5] sm:$0xff] }
  0xdb   :  { %v117_v5 = vmul.f32 0.00048828125, %v116_v4 }
  0xdd   :  { %119 = vst.msk [vmem:[#allocation5] sm:$0xff] %vm103_vm0, %v117_v5 }
  0xde   :  { %168 = shalt.err (!%p165_p9)
}
  0xdf   :  { %129 = dma.vmem_to_hbm [thread:$0]  %s127_s12, 128, %s200_s1, [#allocation4]  }
  0xe0   :  { %179 = dma.done.wait [#allocation4], 128  }
  0xe1   :  { %180 = vsyncadd [#allocation4], 4294967168 }
  0xe2   :  { %133 = vsyncpa [#allocation3], 1 }
  0xe3   :  { %134 = vsyncpa [#allocation4], 1 }

</bundles_post_ra>
